<compile_context>
chip_gen: v7x
topology: tpu7x:2x2x1
jax: 0.10.0
libtpu: 0.0.40
codegen_flags: <defaults>
</compile_context>

<pallas_src>
import functools

import jax
import jax.numpy as jnp
from jax.experimental import pallas as pl
from jax.experimental.pallas import tpu as pltpu

LANES = 128
SUBLANES = 8

_PARALLEL = getattr(pltpu, "PARALLEL", "parallel")
_ARBITRARY = getattr(pltpu, "ARBITRARY", "arbitrary")
_CORE_PARALLEL = getattr(pltpu, "CORE_PARALLEL", _PARALLEL)


def _core_split():
    """Return (num_cores, leading-axis semantic, max_tile_rows) for this chip."""
    try:
        kind = jax.devices()[0].device_kind.lower()
    except Exception:
        return 1, _ARBITRARY, 1024
    if "v7" in kind:
        # v7x: 2 TensorCores per chip; CORE_PARALLEL shards the c axis across
        # them.  Bigger tiles amortize per-step overhead at 3.2 TB/s HBM.
        return 2, _CORE_PARALLEL, 2048
    if "v4" in kind or "v5p" in kind or (
            "v5" in kind and "lite" not in kind and "v5e" not in kind):
        # Megacore chips (2 fused TCs): plain PARALLEL shards across them.
        return 2, _PARALLEL, 1024
    # v5e / v6e: single TensorCore -- a 2-way split would only halve the tile
    # size and double the per-step overhead.
    return 1, _ARBITRARY, 1024


def _tile_config(rows, num_cores, max_tile_rows):
    """tile_rows is always a multiple of SUBLANES; each core owns a contiguous
    run of `tiles_per_core` row-tiles."""
    def _round_up(n):
        return ((n + SUBLANES - 1) // SUBLANES) * SUBLANES

    share = -(-rows // num_cores)
    tile_rows = max(SUBLANES, min(max_tile_rows, _round_up(share)))
    tiles_total = -(-rows // tile_rows)
    if tiles_total < num_cores:           # not enough tiles to split: use 1 core
        num_cores = 1
        tile_rows = max(SUBLANES, min(max_tile_rows, _round_up(rows)))
        tiles_total = -(-rows // tile_rows)
    tiles_per_core = -(-tiles_total // num_cores)
    covered = num_cores * tiles_per_core * tile_rows * LANES
    return num_cores, tile_rows, tiles_per_core, covered


def _focal_kernel(pred_ref, true_ref, out_ref, *, gamma, alpha, total_valid,
                  tiles_per_core, tile_rows, need_mask):
    c = pl.program_id(0)          # core / row-range axis
    i = pl.program_id(1)          # row-tile axis within this core's range

    @pl.when(i == 0)
    def _():
        out_ref[...] = jnp.zeros_like(out_ref)

    x = pred_ref[...].astype(jnp.float32)
    y = true_ref[...].astype(jnp.float32)

    # One exp per element, reused for the BCE log1p term and for the sigmoid.
    e = jnp.exp(-jnp.abs(x))
    bce = jnp.maximum(x, 0.0) - x * y + jnp.log1p(e)

    # sigmoid(x) = where(x>=0, 1, e) / (1+e).  The f32 divide is replaced by an
    # approx EUP reciprocal (free slot) + one Newton step (2 VALU ops).
    d = 1.0 + e
    r = pl.reciprocal(d, approx=True)
    r = r * (2.0 - d * r)
    p = jnp.where(x >= 0.0, 1.0, e) * r

    # Folded: t = 1 - p_t = p + y*(1 - 2p)   (>= 0 up to rounding; cheap guard
    # kept so sqrt never sees a tiny negative).
    t = jnp.maximum(p + y * (1.0 - 2.0 * p), 0.0)
    # Folded: alpha_factor = (1-alpha) + y*(2*alpha - 1)  (constants fold now).
    alpha_factor = (1.0 - alpha) + y * (2.0 * alpha - 1.0)

    if gamma == 1.5:
        mf = t * jnp.sqrt(t)
    elif gamma == 2.0:
        mf = t * t
    elif gamma == 1.0:
        mf = t
    elif gamma == 0.0:
        mf = jnp.ones_like(t)
    else:
        mf = jnp.power(t, gamma)          # generic fallback (exp+log on EUP)

    loss = bce * alpha_factor * mf        # (tile_rows, LANES) f32

    def _accumulate(vals):
        # Reduce the tile to a single (8,128) vreg (vreg-vs-vreg VPU adds) so
        # the resident accumulator / HBM writeback stays at 4 KiB per core.
        out_ref[...] += vals.reshape(tile_rows // SUBLANES, SUBLANES,
                                     LANES).sum(axis=0)

    if need_mask:
        tile_elems = tile_rows * LANES
        tile_start = (c * tiles_per_core + i) * tile_elems   # int32 flat offset
        is_ragged = tile_start + tile_elems > total_valid

        @pl.when(is_ragged)
        def _():
            # Partial / fully-OOB tiles: Pallas clamps / partially reads the
            # input block; any garbage in the out-of-range region is killed by
            # this select (limit <= 0 zeroes a fully-OOB tile entirely).
            row = jax.lax.broadcasted_iota(jnp.int32, (tile_rows, LANES), 0)
            col = jax.lax.broadcasted_iota(jnp.int32, (tile_rows, LANES), 1)
            limit = total_valid - tile_start
            _accumulate(jnp.where(row * LANES + col < limit, loss, 0.0))

        @pl.when(jnp.logical_not(is_ragged))
        def _():
            _accumulate(loss)
    else:
        _accumulate(loss)


def _focal_elementwise(x, y, gamma, alpha):
    """Per-element focal loss in plain jnp (tail handling + reference)."""
    x = x.astype(jnp.float32)
    y = y.astype(jnp.float32)
    bce = jnp.maximum(x, 0.0) - x * y + jnp.log1p(jnp.exp(-jnp.abs(x)))
    p = jax.nn.sigmoid(x)
    p_t = y * p + (1.0 - y) * (1.0 - p)
    af = y * alpha + (1.0 - y) * (1.0 - alpha)
    mf = (1.0 - p_t) ** gamma
    return bce * af * mf


def focal_loss(pred, true, gamma=1.5, alpha=0.25, reduction="mean"):
    """FocalLoss(BCEWithLogitsLoss) forward.  pred/true: same shape, any
    layout/dtype (bf16 welcome: the f32 cast happens in-kernel, so narrow
    inputs halve HBM traffic).  Supports reduction in {'mean', 'sum'}."""
    gamma = float(gamma)
    alpha = float(alpha)
    total = int(pred.size)
    if total == 0:
        raise ValueError("focal_loss: empty input")
    if total >= 2 ** 31 - 2 ** 20:
        raise NotImplementedError(
            "focal_loss: >=2^31 elements not supported by the int32 ragged mask")

    pred_flat = jnp.ravel(pred)            # free reshape, native dtype kept
    true_flat = jnp.ravel(true)

    rows = total // LANES
    aligned = rows * LANES
    tail = total - aligned

    kernel_sum = jnp.float32(0.0)
    if rows > 0:
        if tail == 0:
            pred2d = pred_flat.reshape(rows, LANES)    # free bitcast
            true2d = true_flat.reshape(rows, LANES)
        else:
            # TODO(synk): a raw-HBM (pl.ANY) manual-DMA kernel could consume the
            # unaligned prefix without this slice copy; rare for YOLO maps.
            pred2d = pred_flat[:aligned].reshape(rows, LANES)
            true2d = true_flat[:aligned].reshape(rows, LANES)

        num_cores_hw, core_sem, max_tile_rows = _core_split()

        def run(num_cores, core_sem, max_tile_rows):
            num_cores, tile_rows, tiles_per_core, covered = _tile_config(
                rows, num_cores, max_tile_rows)
            need_mask = covered != aligned
            kernel = functools.partial(
                _focal_kernel, gamma=gamma, alpha=alpha, total_valid=aligned,
                tiles_per_core=tiles_per_core, tile_rows=tile_rows,
                need_mask=need_mask)
            in_map = lambda c, i: (c * tiles_per_core + i, 0)
            return pl.pallas_call(
                kernel,
                out_shape=jax.ShapeDtypeStruct((num_cores * SUBLANES, LANES),
                                               jnp.float32),
                grid_spec=pltpu.PrefetchScalarGridSpec(
                    num_scalar_prefetch=0,
                    grid=(num_cores, tiles_per_core),
                    in_specs=[pl.BlockSpec((tile_rows, LANES), in_map),
                              pl.BlockSpec((tile_rows, LANES), in_map)],
                    out_specs=pl.BlockSpec((SUBLANES, LANES),
                                           lambda c, i: (c, 0)),
                ),
                compiler_params=pltpu.CompilerParams(
                    dimension_semantics=(core_sem, _ARBITRARY)),
            )(pred2d, true2d)

        if num_cores_hw > 1:
            try:
                partials = run(num_cores_hw, core_sem, max_tile_rows)
            except Exception:
                # Unknown chip / rejected cross-core lowering: fall back to the
                # always-valid single-core configuration.
                partials = run(1, _ARBITRARY, 1024)
        else:
            partials = run(1, _ARBITRARY, max_tile_rows)
        kernel_sum = jnp.sum(partials)     # tiny (<=16,128) reduce

    if tail:
        tail_sum = jnp.sum(_focal_elementwise(
            pred_flat[aligned:], true_flat[aligned:], gamma, alpha))
        total_sum = kernel_sum + tail_sum
    else:
        total_sum = kernel_sum

    if reduction == "mean":
        return total_sum / jnp.float32(total)
    if reduction == "sum":
        return total_sum
    # TODO(synk): reduction='none' (per-element output) needs an elementwise
    # output kernel; only 'mean'/'sum' (what YOLOv5 uses) are implemented here.
    raise NotImplementedError(f"reduction={reduction!r} not supported")


def _focal_loss_ref(pred, true, gamma=1.5, alpha=0.25):
    return jnp.mean(_focal_elementwise(pred, true, float(gamma), float(alpha)))


if __name__ == "__main__":
    key = jax.random.PRNGKey(0)
    k1, k2, k3, k4 = jax.random.split(key, 4)

    # Case 1: lane-aligned YOLO-like logit map (zero-copy reshape path).
    pred = jax.random.normal(k1, (2, 4, 16, 16), dtype=jnp.float32) * 2.0
    true = (jax.random.uniform(k2, (2, 4, 16, 16)) > 0.7).astype(jnp.float32)
    out = jax.block_until_ready(focal_loss(pred, true, gamma=1.5, alpha=0.25))
    ref = _focal_loss_ref(pred, true, gamma=1.5, alpha=0.25)
    assert jnp.allclose(out, ref, rtol=1e-4, atol=1e-6), (out, ref)

    # Case 2: ragged size -- exercises the in-kernel ragged-tile mask (rows not
    # a multiple of tile_rows) and the <128-element jnp tail path.
    n2 = 1032 * 128 + 37
    pred2 = jax.random.normal(k3, (n2,), dtype=jnp.float32) * 2.0
    true2 = (jax.random.uniform(k4, (n2,)) > 0.7).astype(jnp.float32)
    out2 = jax.block_until_ready(focal_loss(pred2, true2, gamma=1.5, alpha=0.25))
    ref2 = _focal_loss_ref(pred2, true2, gamma=1.5, alpha=0.25)
    assert jnp.allclose(out2, ref2, rtol=1e-4, atol=1e-6), (out2, ref2)

    print("KERNEL_OK")
</pallas_src>

<mosaic_0001>
module attributes {stable_mosaic.version = 11 : i64} {
  func.func @_focal_kernel(%arg0: i32, %arg1: i32, %arg2: memref<16x128xf32, #tpu.memory_space<vmem>>, %arg3: memref<16x128xf32, #tpu.memory_space<vmem>>, %arg4: memref<8x128xf32, #tpu.memory_space<vmem>>) attributes {dimension_semantics = [#tpu.dimension_semantics<arbitrary>, #tpu.dimension_semantics<arbitrary>], iteration_bounds = array<i64: 1, 1>, scalar_prefetch = 0 : i64, scratch_operands = 0 : i64, tpu.core_type = #tpu.core_type<tc>, window_params = [{transform_indices = @transform_0, window_bounds = array<i64: 16, 128>}, {transform_indices = @transform_1, window_bounds = array<i64: 16, 128>}, {transform_indices = @transform_2, window_bounds = array<i64: 8, 128>}]} {
    %c0_i32 = arith.constant 0 : i32
    %0 = arith.cmpi eq, %arg1, %c0_i32 : i32
    %1 = arith.extui %0 : i1 to i32
    %c0_i32_0 = arith.constant 0 : i32
    %2 = arith.cmpi ne, %1, %c0_i32_0 : i32
    scf.if %2 {
      %cst_19 = arith.constant 0.000000e+00 : f32
      %48 = vector.broadcast %cst_19 : f32 to vector<8x128xf32>
      %c0_20 = arith.constant 0 : index
      %c0_21 = arith.constant 0 : index
      %49 = vector.load %arg4[%c0_20, %c0_21] : memref<8x128xf32, #tpu.memory_space<vmem>>, vector<8x128xf32>
      tpu.vector_store %arg4[%c0_20, %c0_21], %48 {strides = array<i32>} : memref<8x128xf32, #tpu.memory_space<vmem>>, vector<8x128xf32>,
    } else {
    }
    %c0 = arith.constant 0 : index
    %c0_1 = arith.constant 0 : index
    %3 = vector.load %arg2[%c0, %c0_1] : memref<16x128xf32, #tpu.memory_space<vmem>>, vector<16x128xf32>
    %c0_2 = arith.constant 0 : index
    %c0_3 = arith.constant 0 : index
    %4 = vector.load %arg3[%c0_2, %c0_3] : memref<16x128xf32, #tpu.memory_space<vmem>>, vector<16x128xf32>
    %5 = math.absf %3 : vector<16x128xf32>
    %cst = arith.constant 0.000000e+00 : f32
    %6 = vector.broadcast %cst : f32 to vector<16x128xf32>
    %7 = arith.subf %6, %5 : vector<16x128xf32>
    %8 = math.exp %7 : vector<16x128xf32>
    %cst_4 = arith.constant 0.000000e+00 : f32
    %9 = vector.broadcast %cst_4 : f32 to vector<16x128xf32>
    %10 = arith.maximumf %3, %9 : vector<16x128xf32>
    %11 = arith.mulf %3, %4 : vector<16x128xf32>
    %12 = arith.subf %10, %11 : vector<16x128xf32>
    %13 = math.log1p %8 : vector<16x128xf32>
    %14 = arith.addf %12, %13 : vector<16x128xf32>
    %cst_5 = arith.constant 1.000000e+00 : f32
    %15 = vector.broadcast %cst_5 : f32 to vector<16x128xf32>
    %16 = arith.addf %15, %8 : vector<16x128xf32>
    %17 = tpu.reciprocal %16 {approx = true} : vector<16x128xf32> -> vector<16x128xf32>
    %18 = arith.mulf %16, %17 : vector<16x128xf32>
    %cst_6 = arith.constant 2.000000e+00 : f32
    %19 = vector.broadcast %cst_6 : f32 to vector<16x128xf32>
    %20 = arith.subf %19, %18 : vector<16x128xf32>
    %21 = arith.mulf %17, %20 : vector<16x128xf32>
    %cst_7 = arith.constant 0.000000e+00 : f32
    %22 = vector.broadcast %cst_7 : f32 to vector<16x128xf32>
    %23 = arith.cmpf oge, %3, %22 : vector<16x128xf32>
    %cst_8 = arith.constant 1.000000e+00 : f32
    %24 = vector.broadcast %cst_8 : f32 to vector<16x128xf32>
    %25 = arith.select %23, %24, %8 : vector<16x128xi1>, vector<16x128xf32>
    %26 = arith.mulf %25, %21 : vector<16x128xf32>
    %cst_9 = arith.constant 2.000000e+00 : f32
    %27 = vector.broadcast %cst_9 : f32 to vector<16x128xf32>
    %28 = arith.mulf %27, %26 : vector<16x128xf32>
    %cst_10 = arith.constant 1.000000e+00 : f32
    %29 = vector.broadcast %cst_10 : f32 to vector<16x128xf32>
    %30 = arith.subf %29, %28 : vector<16x128xf32>
    %31 = arith.mulf %4, %30 : vector<16x128xf32>
    %32 = arith.addf %26, %31 : vector<16x128xf32>
    %cst_11 = arith.constant 0.000000e+00 : f32
    %33 = vector.broadcast %cst_11 : f32 to vector<16x128xf32>
    %34 = arith.maximumf %32, %33 : vector<16x128xf32>
    %cst_12 = arith.constant -5.000000e-01 : f32
    %35 = vector.broadcast %cst_12 : f32 to vector<16x128xf32>
    %36 = arith.mulf %4, %35 : vector<16x128xf32>
    %cst_13 = arith.constant 7.500000e-01 : f32
    %37 = vector.broadcast %cst_13 : f32 to vector<16x128xf32>
    %38 = arith.addf %37, %36 : vector<16x128xf32>
    %39 = math.sqrt %34 : vector<16x128xf32>
    %40 = arith.mulf %34, %39 : vector<16x128xf32>
    %41 = arith.mulf %14, %38 : vector<16x128xf32>
    %42 = arith.mulf %41, %40 : vector<16x128xf32>
    %c0_14 = arith.constant 0 : index
    %c0_15 = arith.constant 0 : index
    %43 = vector.load %arg4[%c0_14, %c0_15] : memref<8x128xf32, #tpu.memory_space<vmem>>, vector<8x128xf32>
    %44 = vector.shape_cast %42 : vector<16x128xf32> to vector<2x8x128xf32>
    %cst_16 = arith.constant dense<0.000000e+00> : vector<8x128xf32>
    %45 = vector.multi_reduction <add>, %44, %cst_16 [0] : vector<2x8x128xf32> to vector<8x128xf32>
    %46 = arith.addf %43, %45 : vector<8x128xf32>
    %c0_17 = arith.constant 0 : index
    %c0_18 = arith.constant 0 : index
    %47 = vector.load %arg4[%c0_17, %c0_18] : memref<8x128xf32, #tpu.memory_space<vmem>>, vector<8x128xf32>
    tpu.vector_store %arg4[%c0_17, %c0_18], %46 {strides = array<i32>} : memref<8x128xf32, #tpu.memory_space<vmem>>, vector<8x128xf32>,
    return
  }
  func.func @transform_0(%arg0: i32, %arg1: i32) -> (i32, i32) {
    %c1_i32 = arith.constant 1 : i32
    %0 = arith.muli %arg0, %c1_i32 : i32
    %1 = arith.addi %0, %arg1 : i32
    %c0_i32 = arith.constant 0 : i32
    %c0_i32_0 = arith.constant 0 : i32
    return %1, %c0_i32 : i32, i32
  }
  func.func @transform_1(%arg0: i32, %arg1: i32) -> (i32, i32) {
    %c1_i32 = arith.constant 1 : i32
    %0 = arith.muli %arg0, %c1_i32 : i32
    %1 = arith.addi %0, %arg1 : i32
    %c0_i32 = arith.constant 0 : i32
    %c0_i32_0 = arith.constant 0 : i32
    return %1, %c0_i32 : i32, i32
  }
  func.func @transform_2(%arg0: i32, %arg1: i32) -> (i32, i32) {
    %c0_i32 = arith.constant 0 : i32
    %c0_i32_0 = arith.constant 0 : i32
    return %arg0, %c0_i32 : i32, i32
  }
}

</mosaic_0001>

<bundles_post_ra>
// kernel: tpu_custom_call.1
= control target key start
LH: loop header
LB: loop body
LE: loop exit
PB: predicated region body
PF: predicated region fallthrough
CT: control target
= control target key end

     0   :  { %7 = vsyncpa [#allocation3], 0  ;;  %s327_s0 = inlined_call_operand.hbm [shape: f32[16,128], index: 0, kind: input, shape index: {}]   ;;  %s328_s1 = inlined_call_operand.hbm [shape: f32[16,128], index: 1, kind: input, shape index: {}]   ;;  %s329_s2 = inlined_call_operand.hbm [shape: f32[8,128], index: 2, kind: output, shape index: {}]  }
   0x1   :  { %8 = vsyncpa [#allocation6], 0 }
   0x2   :  { %9 = vsyncpa [#allocation4], 0  ;;  %s259_s9 = smov [#allocation2]   ;;  %s187_s13 = scalar_lea.hbm %s327_s0, 256 }
   0x3   :  { %s19_s10 = sshll.u32 %s259_s9, 4  ;;  %p188_p0 = scmp.ne.s32.totalorder %s327_s0, %s187_s13  ;;  %s20_s10 = int_to_ptr.vmem [resolvable:$true] %s19_s10 }
   0x4   :  { %p191_p1 = scmp.lt.u32.totalorder %s187_s13, %s327_s0 }
   0x6   :  { %p193_p2 = pnand %p191_p1, %p188_p0 }
   0x8   :  { %196 = shalt.err (!%p193_p2)
}
   0x9   :  { %s197_s18 = scalar_lea.vmem %s20_s10, 256  ;;  %p202_p4 = scmp.lt.s32.totalorder %s20_s10, %s20_s10 }
   0xa   :  { %p198_p3 = scmp.ne.s32.totalorder %s20_s10, %s197_s18  ;;  %p203_p5 = scmp.lt.s32.totalorder %s197_s18, %s197_s18 }
   0xc   :  { %p204_p6 = por %p203_p5, %p202_p4 }
   0xe   :  { %p205_p7 = pnand %p204_p6, %p198_p3 }
  0x10   :  { %208 = shalt.err (!%p205_p7)
}
  0x11   :  { %s260_s19 = smov 128   ;;  %s261_s20 = smov 8  }
  0x12   :  { %25 = dma.hbm_to_vmem [thread:$0]  %s327_s0, 256, %s20_s10, [#allocation3], %s260_s19, %s260_s19, %s261_s20  }
  0x13   :  { %s262_s23 = smov [#allocation5]   ;;  %s209_s27 = scalar_lea.hbm %s328_s1, 256 }
  0x14   :  { %s35_s24 = sshll.u32 %s262_s23, 4  ;;  %p210_p8 = scmp.ne.s32.totalorder %s328_s1, %s209_s27  ;;  %s36_s24 = int_to_ptr.vmem [resolvable:$true] %s35_s24 }
  0x15   :  { %p213_p9 = scmp.lt.u32.totalorder %s209_s27, %s328_s1 }
  0x17   :  { %p215_p10 = pnand %p213_p9, %p210_p8 }
  0x19   :  { %218 = shalt.err (!%p215_p10)
}
  0x1a   :  { %s219_s4 = scalar_lea.vmem %s36_s24, 256  ;;  %p224_p12 = scmp.lt.s32.totalorder %s36_s24, %s36_s24 }
  0x1b   :  { %p220_p11 = scmp.ne.s32.totalorder %s36_s24, %s219_s4  ;;  %p225_p13 = scmp.lt.s32.totalorder %s219_s4, %s219_s4 }
  0x1d   :  { %p226_p0 = por %p225_p13, %p224_p12 }
  0x1f   :  { %p227_p1 = pnand %p226_p0, %p220_p11 }
  0x21   :  { %230 = shalt.err (!%p227_p1)
}
  0x22   :  { %41 = dma.hbm_to_vmem [thread:$0]  %s328_s1, 256, %s36_s24, [#allocation6], %s260_s19, %s260_s19, %s261_s20  }
  0x23   :  { %253 = dma.done.wait [#allocation3], 256  }
  0x24   :  { %254 = vsyncadd [#allocation3], 4294967040 }
  0x25   :  { %255 = dma.done.wait [#allocation6], 256  }
  0x26   :  { %256 = vsyncadd [#allocation6], 4294967040  ;;  %v303_v0 = vld [vmem:[#allocation2] sm:$0xff]  ;;  %v305_v1 = vld [vmem:[#allocation2 + $0x8] sm:$0xff]  ;;  %s263_s1 = smov [#allocation7]  }
  0x27   :  { %v61_v2 = vand.u32 2147483647, %v303_v0  ;;  %v62_v3 = vand.u32 2147483647, %v305_v1  ;;  %vm105_vm0 = vcmp.ge.f32.partialorder %v303_v0, 0.0  ;;  %vm106_vm1 = vcmp.ge.f32.partialorder %v305_v1, 0.0 }
  0x28   :  { %v59_v25 = vld [vmem:[#allocation5] sm:$0xff]  ;;  %v60_v27 = vld [vmem:[#allocation5 + $0x8] sm:$0xff]  ;;  %v69_v44 = vmax.f32 %v303_v0, 0.0  ;;  %v70_v46 = vmax.f32 %v305_v1, 0.0  ;;  %s155_s6 = sshll.u32 %s263_s1, 4  ;;  %s156_s6 = int_to_ptr.vmem [resolvable:$true] %s155_s6 }
  0x29   :  { %v63_v4 = vsub.f32 0.0, %v61_v2  ;;  %v64_v5 = vsub.f32 0.0, %v62_v3  ;;  %v71_v45 = vmul.f32 %v59_v25, %v303_v0  ;;  %v72_v47 = vmul.f32 %v60_v27, %v305_v1  ;;  %s231_s7 = scalar_lea.vmem %s156_s6, 128  ;;  %p236_p3 = scmp.lt.s32.totalorder %s156_s6, %s156_s6 }
  0x2a   :  { %v121_v53 = vmul.f32 -0.5, %v59_v25  ;;  %v122_v56 = vmul.f32 -0.5, %v60_v27  ;;  %p232_p2 = scmp.ne.s32.totalorder %s156_s6, %s231_s7  ;;  %p237_p4 = scmp.lt.s32.totalorder %s231_s7, %s231_s7 }
  0x2b   :  { %v65_v6 = vmul.f32 1.442695, %v63_v4  ;;  %v67_v7 = vmul.f32 1.442695, %v64_v5  ;;  %v73_v52 = vsub.f32 %v69_v44, %v71_v45  ;;  %v74_v54 = vsub.f32 %v70_v46, %v72_v47 }
  0x2c   :  { %v123_v59 = vadd.f32 0.75, %v121_v53  ;;  %v124_v62 = vadd.f32 0.75, %v122_v56  ;;  %p238_p5 = por %p237_p4, %p236_p3 }
  0x2d   :  { %171 = vpow2.f32 %v65_v6 }
  0x2e   :  { %173 = vpow2.f32 %v67_v7  ;;  %p239_p6 = pnand %p238_p5, %p232_p2 }
  0x37   :  { %v172_v8 = vpop.eup %171 }
  0x38   :  { %v174_v9 = vpop.eup %173  ;;  %v75_v10 = vadd.f32 1.0, %v172_v8  ;;  %v107_v18 = vsel %vm105_vm0, 1.0, %v172_v8  ;;  %v78_v30 = vmul.f32 -0.5, %v172_v8  ;;  %v81_v39 = vand.u32 2147483647, %v172_v8 }
  0x39   :  { %v84_v11 = vadd.f32 1.0, %v174_v9  ;;  %v108_v20 = vsel %vm106_vm1, 1.0, %v174_v9  ;;  %v87_v32 = vmul.f32 -0.5, %v174_v9  ;;  %v90_v43 = vand.u32 2147483647, %v174_v9 }
  0x3a   :  { %175 = vrcp.f32 %v75_v10  ;;  %v79_v36 = vadd.f32 1.0, %v78_v30  ;;  %vm82_vm2 = vcmp.lt.f32.partialorder %v81_v39, 0.0004427343 }
  0x3b   :  { %177 = vrcp.f32 %v84_v11  ;;  %v88_v40 = vadd.f32 1.0, %v87_v32  ;;  %vm91_vm3 = vcmp.lt.f32.partialorder %v90_v43, 0.0004427343 }
  0x3c   :  { %179 = vlog2.f32 %v75_v10  ;;  %v80_v49 = vmul.f32 %v172_v8, %v79_v36 }
  0x3d   :  { %181 = vlog2.f32 %v84_v11  ;;  %v89_v51 = vmul.f32 %v174_v9, %v88_v40 }
  0x44   :  { %v176_v12 = vpop.eup %175 }
  0x45   :  { %v178_v13 = vpop.eup %177  ;;  %v99_v14 = vmul.f32 %v176_v12, %v75_v10 }
  0x46   :  { %v100_v15 = vmul.f32 %v178_v13, %v84_v11  ;;  %v180_v38 = vpop.eup %179 }
  0x47   :  { %v101_v16 = vsub.f32 2.0, %v99_v14  ;;  %v182_v42 = vpop.eup %181  ;;  %v77_v48 = vmul.f32 0.6931472, %v180_v38 }
  0x48   :  { %v102_v17 = vsub.f32 2.0, %v100_v15  ;;  %v86_v50 = vmul.f32 0.6931472, %v182_v42 }
  0x49   :  { %v103_v19 = vmul.f32 %v176_v12, %v101_v16  ;;  %v83_v55 = vsel %vm82_vm2, %v80_v49, %v77_v48 }
  0x4a   :  { %v104_v21 = vmul.f32 %v178_v13, %v102_v17  ;;  %v92_v57 = vsel %vm91_vm3, %v89_v51, %v86_v50  ;;  %v93_v58 = vadd.f32 %v83_v55, %v73_v52 }
  0x4b   :  { %v109_v22 = vmul.f32 %v107_v18, %v103_v19  ;;  %v94_v61 = vadd.f32 %v92_v57, %v74_v54 }
  0x4c   :  { %v110_v23 = vmul.f32 %v108_v20, %v104_v21  ;;  %v141_v5 = vmul.f32 %v123_v59, %v93_v58 }
  0x4d   :  { %v111_v24 = vmul.f32 2.0, %v109_v22  ;;  %v142_v8 = vmul.f32 %v124_v62, %v94_v61 }
  0x4e   :  { %v112_v26 = vmul.f32 2.0, %v110_v23 }
  0x4f   :  { %v113_v28 = vsub.f32 1.0, %v111_v24 }
  0x50   :  { %v114_v29 = vsub.f32 1.0, %v112_v26 }
  0x51   :  { %v115_v31 = vmul.f32 %v113_v28, %v59_v25 }
  0x52   :  { %v116_v33 = vmul.f32 %v114_v29, %v60_v27 }
  0x53   :  { %v117_v34 = vadd.f32 %v115_v31, %v109_v22 }
  0x54   :  { %v118_v35 = vadd.f32 %v116_v33, %v110_v23 }
  0x55   :  { %v119_v37 = vmax.f32 %v117_v34, 0.0 }
  0x56   :  { %v120_v41 = vmax.f32 %v118_v35, 0.0 }
  0x57   :  { %183 = vrsqrt.f32 %v119_v37  ;;  %vm127_vm4 = vcmp.eq.f32.partialorder %v119_v37, inf  ;;  %v130_v63 = vand.u32 2147483648, %v119_v37  ;;  %vm129_vm5 = vcmp.eq.f32.partialorder %v119_v37, 0.0 }
  0x58   :  { %185 = vrsqrt.f32 %v120_v41  ;;  %vm134_vm6 = vcmp.eq.f32.partialorder %v120_v41, inf  ;;  %v137_v2 = vand.u32 2147483648, %v120_v41  ;;  %vm136_vm7 = vcmp.eq.f32.partialorder %v120_v41, 0.0 }
  0x61   :  { %v184_v60 = vpop.eup %183 }
  0x62   :  { %v186_v0 = vpop.eup %185  ;;  %v126_v1 = vmul.f32 %v184_v60, %v119_v37 }
  0x63   :  { %v133_v3 = vmul.f32 %v186_v0, %v120_v41 }
  0x64   :  { %v128_v4 = vsel %vm127_vm4, %v119_v37, %v126_v1 }
  0x65   :  { %v131_v6 = vsel %vm129_vm5, %v130_v63, %v128_v4  ;;  %v135_v7 = vsel %vm134_vm6, %v120_v41, %v133_v3 }
  0x66   :  { %v138_v9 = vsel %vm136_vm7, %v137_v2, %v135_v7  ;;  %v139_v10 = vmul.f32 %v131_v6, %v119_v37 }
  0x67   :  { %v140_v11 = vmul.f32 %v138_v9, %v120_v41 }
  0x68   :  { %v143_v12 = vmul.f32 %v141_v5, %v139_v10 }
  0x69   :  { %v144_v13 = vmul.f32 %v142_v8, %v140_v11 }
  0x6b   :  { %v146_v14 = vadd.f32 %v144_v13, %v143_v12 }
  0x6d   :  { %148 = vst [vmem:[#allocation7] sm:$0xff] %v146_v14 }
  0x6e   :  { %242 = shalt.err (!%p239_p6)
}
  0x6f   :  { %s243_s10 = scalar_lea.hbm %s329_s2, 128 }
  0x70   :  { %p244_p7 = scmp.ne.s32.totalorder %s329_s2, %s243_s10  ;;  %p247_p8 = scmp.lt.u32.totalorder %s243_s10, %s329_s2 }
  0x72   :  { %p249_p9 = pnand %p247_p8, %p244_p7 }
  0x74   :  { %252 = shalt.err (!%p249_p9)
}
  0x75   :  { %158 = dma.vmem_to_hbm [thread:$0]  %s156_s6, 128, %s329_s2, [#allocation4]  }
  0x76   :  { %257 = dma.done.wait [#allocation4], 128  }
  0x77   :  { %258 = vsyncadd [#allocation4], 4294967168 }
  0x78   :  { %162 = vsyncpa [#allocation3], 1 }
  0x79   :  { %163 = vsyncpa [#allocation6], 1 }
  0x7a   :  { %164 = vsyncpa [#allocation4], 1 }

</bundles_post_ra>
